<compile_context>
chip_gen: v5e
topology: v5e:2x2
jax: 0.10.0
libtpu: 0.0.40
codegen_flags: <defaults>
</compile_context>

<pallas_src>
import functools

import jax
import jax.numpy as jnp
from jax import lax
from jax.experimental import pallas as pl
from jax.experimental.pallas import tpu as pltpu
import numpy as np


def _pack_kh_taps_bf16(a, width, mask_top, mask_bot):
    """(C, HW) f32 -> (3C, HW) bf16: kh = {i-1, i, i+1} row taps stacked along
    the contraction (sublane) dim.

    Row shifts are rolls by +-width along the flattened pixel (lane) axis; the
    wrapped rows (image top/bottom) are zeroed with a select.  Rolls stay in
    f32 (XLU slot); each element is cast to bf16 exactly once.
    """
    hw = a.shape[1]
    up = jnp.where(mask_top, 0.0, pltpu.roll(a, width, axis=1))         # x[i-1, j]
    down = jnp.where(mask_bot, 0.0, pltpu.roll(a, hw - width, axis=1))  # x[i+1, j]
    return jnp.concatenate(
        [up.astype(jnp.bfloat16), a.astype(jnp.bfloat16), down.astype(jnp.bfloat16)],
        axis=0)


def _conv3x3_chw(a, w_ref, width, mask_top, mask_bot, mask_left, mask_right):
    """3x3 'SAME' conv of a (Cin, HW) f32 image.

    w_ref: (3, Cout, 3*Cin) bf16, kw-major; each row block ordered (kh, cin).
    One K=3*Cin MXU matmul per kw tap; the +-1 column shift is applied to the
    f32 matmul *output* with an XLU roll + boundary mask (no padded scratch,
    no extra copies of the activations).  Requires Cin == Cout for the masks
    (guaranteed by the no-downsample BasicBlock).  Returns (Cout, HW) f32.
    """
    hw = a.shape[1]
    packed = _pack_kh_taps_bf16(a, width, mask_top, mask_bot)           # (3Cin, HW) bf16
    m0 = jnp.dot(w_ref[0], packed, preferred_element_type=jnp.float32)  # kw = 0
    m1 = jnp.dot(w_ref[1], packed, preferred_element_type=jnp.float32)  # kw = 1
    m2 = jnp.dot(w_ref[2], packed, preferred_element_type=jnp.float32)  # kw = 2
    acc = m1
    acc = acc + jnp.where(mask_left, 0.0, pltpu.roll(m0, 1, axis=1))        # tap j-1
    acc = acc + jnp.where(mask_right, 0.0, pltpu.roll(m2, hw - 1, axis=1))  # tap j+1
    return acc


def basic_block_kernel(x_ref, w1_ref, b1_ref, w2_ref, b2_ref, out_ref, *, width):
    """Fused BasicBlock for one image, channels-major.

    x_ref  : (1, Cin, H*W)     f32
    w1_ref : (3, Cout, 3*Cin)  bf16, BN1 scale folded in
    b1_ref : (Cout, 1)         f32 folded BN1 bias
    w2_ref : (3, Cout, 3*Cout) bf16, BN2 scale folded in
    b2_ref : (Cout, 1)         f32 folded BN2 bias
    out_ref: (1, Cout, H*W)    f32
    """
    x = x_ref[0]                                  # (Cin, HW) f32, lane-dense load
    hw = x.shape[1]

    # Boundary masks, computed once and shared by both convs (Cin == Cout).
    lane = lax.broadcasted_iota(jnp.int32, x.shape, 1)
    col = lane % width
    mask_top = lane < width                        # image row 0    (no i-1 neighbour)
    mask_bot = lane >= hw - width                  # image row H-1  (no i+1 neighbour)
    mask_left = col == 0                           # image col 0    (no j-1 neighbour)
    mask_right = col == width - 1                  # image col W-1  (no j+1 neighbour)

    # conv1 + folded BN1 + ReLU
    h = _conv3x3_chw(x, w1_ref, width, mask_top, mask_bot, mask_left, mask_right)
    h = jnp.maximum(h + b1_ref[...], 0.0)

    # conv2 + folded BN2 + residual add + ReLU
    y = _conv3x3_chw(h, w2_ref, width, mask_top, mask_bot, mask_left, mask_right)
    out_ref[0] = jnp.maximum(y + b2_ref[...] + x, 0.0)   # (Cout, HW), lane-dense store


def basic_block_pallas(x_nchw, w1, gamma1, beta1, mean1, var1,
                       w2, gamma2, beta2, mean2, var2, eps=1e-5):
    """x_nchw: (N, C, H, W) float32.  w1, w2: (Cout, Cin, 3, 3) PyTorch OIHW."""
    N, Cin, H, W = x_nchw.shape
    Cout = w1.shape[0]
    assert Cin == Cout, "no downsample: inplanes must equal planes"
    HW = H * W

    # Channels-major flat layout: free reshape -- no transpose, no HBM pad.
    x_r = x_nchw.reshape(N, Cin, HW)

    # Fold BN (eval mode, running stats): scale into the conv weights (exact,
    # done in f32 before the bf16 cast); bias kept as an f32 column.
    s1 = gamma1 / jnp.sqrt(var1 + eps)
    s2 = gamma2 / jnp.sqrt(var2 + eps)
    b1 = (beta1 - mean1 * s1).reshape(Cout, 1)
    b2 = (beta2 - mean2 * s2).reshape(Cout, 1)

    # OIHW -> (kw, Cout, kh, Cin) -> (3, Cout, 3*Cin): one (Cout, 3*Cin) matmul
    # weight per kw tap, contraction rows ordered (kh, cin) to match the
    # kernel's kh-tap packing.  BN scale multiplied along Cout in f32.
    w1_r = (jnp.transpose(w1, (3, 0, 2, 1)).reshape(3, Cout, 3 * Cin)
            * s1[None, :, None]).astype(jnp.bfloat16)
    w2_r = (jnp.transpose(w2, (3, 0, 2, 1)).reshape(3, Cout, 3 * Cout)
            * s2[None, :, None]).astype(jnp.bfloat16)

    kernel = functools.partial(basic_block_kernel, width=W)

    out = pl.pallas_call(
        kernel,
        out_shape=jax.ShapeDtypeStruct((N, Cout, HW), jnp.float32),
        grid_spec=pltpu.PrefetchScalarGridSpec(
            num_scalar_prefetch=0,
            grid=(N,),
            in_specs=[
                pl.BlockSpec((1, Cin, HW), lambda n: (n, 0, 0)),
                pl.BlockSpec((3, Cout, 3 * Cin), lambda n: (0, 0, 0)),
                pl.BlockSpec((Cout, 1), lambda n: (0, 0)),
                pl.BlockSpec((3, Cout, 3 * Cout), lambda n: (0, 0, 0)),
                pl.BlockSpec((Cout, 1), lambda n: (0, 0)),
            ],
            out_specs=pl.BlockSpec((1, Cout, HW), lambda n: (n, 0, 0)),
        ),
        compiler_params=pltpu.CompilerParams(
            dimension_semantics=("parallel",)),
    )(x_r, w1_r, b1, w2_r, b2)

    # Free reshape back to NCHW -- the kernel already writes channels-major.
    return out.reshape(N, Cout, H, W)


def basic_block_reference(x_nchw, w1, gamma1, beta1, mean1, var1,
                          w2, gamma2, beta2, mean2, var2, eps=1e-5):
    """Pure-JAX f32 reference (NCHW, matches PyTorch eval-mode BasicBlock)."""
    def bn(o, g, b, m, v):
        s = g / jnp.sqrt(v + eps)
        return o * s[None, :, None, None] + (b - m * s)[None, :, None, None]

    dn = ('NCHW', 'OIHW', 'NCHW')
    out = lax.conv_general_dilated(x_nchw, w1, (1, 1), 'SAME',
                                   dimension_numbers=dn)
    out = jnp.maximum(bn(out, gamma1, beta1, mean1, var1), 0.0)
    out = lax.conv_general_dilated(out, w2, (1, 1), 'SAME',
                                   dimension_numbers=dn)
    out = bn(out, gamma2, beta2, mean2, var2)
    return jnp.maximum(out + x_nchw, 0.0)


if __name__ == "__main__":
    key = jax.random.PRNGKey(0)
    N, C, H, W = 2, 8, 16, 16  # inplanes == planes, stride=1, no downsample

    ks = jax.random.split(key, 8)
    x = jax.random.normal(ks[0], (N, C, H, W), jnp.float32)
    w1 = jax.random.normal(ks[1], (C, C, 3, 3), jnp.float32) * 0.1
    w2 = jax.random.normal(ks[2], (C, C, 3, 3), jnp.float32) * 0.1
    gamma1 = 1.0 + 0.1 * jax.random.normal(ks[3], (C,), jnp.float32)
    beta1 = 0.1 * jax.random.normal(ks[4], (C,), jnp.float32)
    gamma2 = 1.0 + 0.1 * jax.random.normal(ks[5], (C,), jnp.float32)
    beta2 = 0.1 * jax.random.normal(ks[6], (C,), jnp.float32)
    mean1 = 0.05 * jax.random.normal(ks[7], (C,), jnp.float32)
    var1 = jnp.abs(1.0 + 0.1 * jax.random.normal(ks[3], (C,), jnp.float32))
    mean2 = jnp.zeros((C,), jnp.float32)
    var2 = jnp.ones((C,), jnp.float32)

    out = basic_block_pallas(x, w1, gamma1, beta1, mean1, var1,
                             w2, gamma2, beta2, mean2, var2)
    out = jax.block_until_ready(out)

    ref = basic_block_reference(x, w1, gamma1, beta1, mean1, var1,
                                w2, gamma2, beta2, mean2, var2)
    ref = jax.block_until_ready(ref)

    # bf16 matmul operands (f32 accumulation) vs f32 reference -> loose tol.
    np.testing.assert_allclose(np.asarray(out), np.asarray(ref),
                               rtol=3e-2, atol=3e-2)
    print("KERNEL_OK")
</pallas_src>

<mosaic_0001>
module attributes {stable_mosaic.version = 11 : i64} {
  func.func @basic_block_kernel(%arg0: i32, %arg1: memref<1x8x256xf32, #tpu.memory_space<vmem>>, %arg2: memref<3x8x24xbf16, #tpu.memory_space<vmem>>, %arg3: memref<8x1xf32, #tpu.memory_space<vmem>>, %arg4: memref<3x8x24xbf16, #tpu.memory_space<vmem>>, %arg5: memref<8x1xf32, #tpu.memory_space<vmem>>, %arg6: memref<1x8x256xf32, #tpu.memory_space<vmem>>) attributes {dimension_semantics = [#tpu.dimension_semantics<parallel>], iteration_bounds = array<i64: 2>, scalar_prefetch = 0 : i64, scratch_operands = 0 : i64, tpu.core_type = #tpu.core_type<tc>, window_params = [{transform_indices = @transform_0, window_bounds = array<i64: 1, 8, 256>}, {pipeline_mode = #tpu.pipeline_mode<synchronous>, transform_indices = @transform_1, window_bounds = array<i64: 3, 8, 24>}, {pipeline_mode = #tpu.pipeline_mode<synchronous>, transform_indices = @transform_2, window_bounds = array<i64: 8, 1>}, {pipeline_mode = #tpu.pipeline_mode<synchronous>, transform_indices = @transform_3, window_bounds = array<i64: 3, 8, 24>}, {pipeline_mode = #tpu.pipeline_mode<synchronous>, transform_indices = @transform_4, window_bounds = array<i64: 8, 1>}, {transform_indices = @transform_5, window_bounds = array<i64: 1, 8, 256>}]} {
    %c0 = arith.constant 0 : index
    %c0_0 = arith.constant 0 : index
    %c0_1 = arith.constant 0 : index
    %0 = vector.load %arg1[%c0, %c0_0, %c0_1] : memref<1x8x256xf32, #tpu.memory_space<vmem>>, vector<1x8x256xf32>
    %1 = vector.shape_cast %0 : vector<1x8x256xf32> to vector<8x256xf32>
    %2 = tpu.iota {dimensions = array<i32: 1>} : vector<8x256xi32>
    %c16_i32 = arith.constant 16 : i32
    %c0_i32 = arith.constant 0 : i32
    %3 = arith.cmpi eq, %c16_i32, %c0_i32 : i32
    %c1_i32 = arith.constant 1 : i32
    %4 = arith.select %3, %c1_i32, %c16_i32 : i32
    %5 = vector.broadcast %4 : i32 to vector<8x256xi32>
    %6 = arith.remsi %2, %5 : vector<8x256xi32>
    %c0_i32_2 = arith.constant 0 : i32
    %7 = vector.broadcast %c0_i32_2 : i32 to vector<8x256xi32>
    %8 = arith.cmpi ne, %6, %7 : vector<8x256xi32>
    %c0_i32_3 = arith.constant 0 : i32
    %9 = vector.broadcast %c0_i32_3 : i32 to vector<8x256xi32>
    %10 = arith.cmpi slt, %6, %9 : vector<8x256xi32>
    %c0_i32_4 = arith.constant 0 : i32
    %11 = arith.cmpi slt, %4, %c0_i32_4 : i32
    %12 = vector.broadcast %11 : i1 to vector<8x256xi1>
    %13 = vector.broadcast %12 : vector<8x256xi1> to vector<8x256xi1>
    %14 = arith.xori %10, %13 : vector<8x256xi1>
    %15 = arith.andi %14, %8 : vector<8x256xi1>
    %16 = vector.broadcast %4 : i32 to vector<8x256xi32>
    %17 = arith.addi %6, %16 : vector<8x256xi32>
    %18 = arith.select %15, %17, %6 : vector<8x256xi1>, vector<8x256xi32>
    %c16_i32_5 = arith.constant 16 : i32
    %19 = vector.broadcast %c16_i32_5 : i32 to vector<8x256xi32>
    %20 = arith.cmpi slt, %2, %19 : vector<8x256xi32>
    %c240_i32 = arith.constant 240 : i32
    %21 = vector.broadcast %c240_i32 : i32 to vector<8x256xi32>
    %22 = arith.cmpi sge, %2, %21 : vector<8x256xi32>
    %c0_i32_6 = arith.constant 0 : i32
    %23 = vector.broadcast %c0_i32_6 : i32 to vector<8x256xi32>
    %24 = arith.cmpi eq, %18, %23 : vector<8x256xi32>
    %c15_i32 = arith.constant 15 : i32
    %25 = vector.broadcast %c15_i32 : i32 to vector<8x256xi32>
    %26 = arith.cmpi eq, %18, %25 : vector<8x256xi32>
    %c16_i32_7 = arith.constant 16 : i32
    %27 = tpu.dynamic_rotate %1 by %c16_i32_7 dim 1 : vector<8x256xf32>, i32 -> vector<8x256xf32>
    %cst = arith.constant 0.000000e+00 : f32
    %28 = vector.broadcast %cst : f32 to vector<8x256xf32>
    %29 = arith.select %20, %28, %27 : vector<8x256xi1>, vector<8x256xf32>
    %c240_i32_8 = arith.constant 240 : i32
    %30 = tpu.dynamic_rotate %1 by %c240_i32_8 dim 1 : vector<8x256xf32>, i32 -> vector<8x256xf32>
    %cst_9 = arith.constant 0.000000e+00 : f32
    %31 = vector.broadcast %cst_9 : f32 to vector<8x256xf32>
    %32 = arith.select %22, %31, %30 : vector<8x256xi1>, vector<8x256xf32>
    %33 = arith.truncf %29 : vector<8x256xf32> to vector<8x256xbf16>
    %34 = arith.truncf %1 : vector<8x256xf32> to vector<8x256xbf16>
    %35 = arith.truncf %32 : vector<8x256xf32> to vector<8x256xbf16>
    %36 = tpu.concatenate %33, %34, %35 in 0 : vector<8x256xbf16>, vector<8x256xbf16>, vector<8x256xbf16> -> vector<24x256xbf16>
    %c0_10 = arith.constant 0 : index
    %c0_11 = arith.constant 0 : index
    %c0_12 = arith.constant 0 : index
    %37 = vector.load %arg2[%c0_10, %c0_11, %c0_12] : memref<3x8x24xbf16, #tpu.memory_space<vmem>>, vector<1x8x24xbf16>
    %38 = vector.shape_cast %37 : vector<1x8x24xbf16> to vector<8x24xbf16>
    %cst_13 = arith.constant dense<0.000000e+00> : vector<8x256xf32>
    %39 = tpu.matmul %38, %36, %cst_13 {dimension_numbers = #tpu.dot_dimension_numbers<[1], [0], [0], [1], [0, 0, 1, 1], [], []>} : vector<8x24xbf16>, vector<24x256xbf16>, vector<8x256xf32> -> vector<8x256xf32>
    %c1 = arith.constant 1 : index
    %c0_14 = arith.constant 0 : index
    %c0_15 = arith.constant 0 : index
    %40 = vector.load %arg2[%c1, %c0_14, %c0_15] : memref<3x8x24xbf16, #tpu.memory_space<vmem>>, vector<1x8x24xbf16>
    %41 = vector.shape_cast %40 : vector<1x8x24xbf16> to vector<8x24xbf16>
    %cst_16 = arith.constant dense<0.000000e+00> : vector<8x256xf32>
    %42 = tpu.matmul %41, %36, %cst_16 {dimension_numbers = #tpu.dot_dimension_numbers<[1], [0], [0], [1], [0, 0, 1, 1], [], []>} : vector<8x24xbf16>, vector<24x256xbf16>, vector<8x256xf32> -> vector<8x256xf32>
    %c2 = arith.constant 2 : index
    %c0_17 = arith.constant 0 : index
    %c0_18 = arith.constant 0 : index
    %43 = vector.load %arg2[%c2, %c0_17, %c0_18] : memref<3x8x24xbf16, #tpu.memory_space<vmem>>, vector<1x8x24xbf16>
    %44 = vector.shape_cast %43 : vector<1x8x24xbf16> to vector<8x24xbf16>
    %cst_19 = arith.constant dense<0.000000e+00> : vector<8x256xf32>
    %45 = tpu.matmul %44, %36, %cst_19 {dimension_numbers = #tpu.dot_dimension_numbers<[1], [0], [0], [1], [0, 0, 1, 1], [], []>} : vector<8x24xbf16>, vector<24x256xbf16>, vector<8x256xf32> -> vector<8x256xf32>
    %c1_i32_20 = arith.constant 1 : i32
    %46 = tpu.dynamic_rotate %39 by %c1_i32_20 dim 1 : vector<8x256xf32>, i32 -> vector<8x256xf32>
    %cst_21 = arith.constant 0.000000e+00 : f32
    %47 = vector.broadcast %cst_21 : f32 to vector<8x256xf32>
    %48 = arith.select %24, %47, %46 : vector<8x256xi1>, vector<8x256xf32>
    %49 = arith.addf %42, %48 : vector<8x256xf32>
    %c255_i32 = arith.constant 255 : i32
    %50 = tpu.dynamic_rotate %45 by %c255_i32 dim 1 : vector<8x256xf32>, i32 -> vector<8x256xf32>
    %cst_22 = arith.constant 0.000000e+00 : f32
    %51 = vector.broadcast %cst_22 : f32 to vector<8x256xf32>
    %52 = arith.select %26, %51, %50 : vector<8x256xi1>, vector<8x256xf32>
    %53 = arith.addf %49, %52 : vector<8x256xf32>
    %c0_23 = arith.constant 0 : index
    %c0_24 = arith.constant 0 : index
    %54 = vector.load %arg3[%c0_23, %c0_24] : memref<8x1xf32, #tpu.memory_space<vmem>>, vector<8x1xf32>
    %55 = vector.broadcast %54 : vector<8x1xf32> to vector<8x256xf32>
    %56 = arith.addf %53, %55 : vector<8x256xf32>
    %cst_25 = arith.constant 0.000000e+00 : f32
    %57 = vector.broadcast %cst_25 : f32 to vector<8x256xf32>
    %58 = arith.maximumf %56, %57 : vector<8x256xf32>
    %c16_i32_26 = arith.constant 16 : i32
    %59 = tpu.dynamic_rotate %58 by %c16_i32_26 dim 1 : vector<8x256xf32>, i32 -> vector<8x256xf32>
    %cst_27 = arith.constant 0.000000e+00 : f32
    %60 = vector.broadcast %cst_27 : f32 to vector<8x256xf32>
    %61 = arith.select %20, %60, %59 : vector<8x256xi1>, vector<8x256xf32>
    %c240_i32_28 = arith.constant 240 : i32
    %62 = tpu.dynamic_rotate %58 by %c240_i32_28 dim 1 : vector<8x256xf32>, i32 -> vector<8x256xf32>
    %cst_29 = arith.constant 0.000000e+00 : f32
    %63 = vector.broadcast %cst_29 : f32 to vector<8x256xf32>
    %64 = arith.select %22, %63, %62 : vector<8x256xi1>, vector<8x256xf32>
    %65 = arith.truncf %61 : vector<8x256xf32> to vector<8x256xbf16>
    %66 = arith.truncf %58 : vector<8x256xf32> to vector<8x256xbf16>
    %67 = arith.truncf %64 : vector<8x256xf32> to vector<8x256xbf16>
    %68 = tpu.concatenate %65, %66, %67 in 0 : vector<8x256xbf16>, vector<8x256xbf16>, vector<8x256xbf16> -> vector<24x256xbf16>
    %c0_30 = arith.constant 0 : index
    %c0_31 = arith.constant 0 : index
    %c0_32 = arith.constant 0 : index
    %69 = vector.load %arg4[%c0_30, %c0_31, %c0_32] : memref<3x8x24xbf16, #tpu.memory_space<vmem>>, vector<1x8x24xbf16>
    %70 = vector.shape_cast %69 : vector<1x8x24xbf16> to vector<8x24xbf16>
    %cst_33 = arith.constant dense<0.000000e+00> : vector<8x256xf32>
    %71 = tpu.matmul %70, %68, %cst_33 {dimension_numbers = #tpu.dot_dimension_numbers<[1], [0], [0], [1], [0, 0, 1, 1], [], []>} : vector<8x24xbf16>, vector<24x256xbf16>, vector<8x256xf32> -> vector<8x256xf32>
    %c1_34 = arith.constant 1 : index
    %c0_35 = arith.constant 0 : index
    %c0_36 = arith.constant 0 : index
    %72 = vector.load %arg4[%c1_34, %c0_35, %c0_36] : memref<3x8x24xbf16, #tpu.memory_space<vmem>>, vector<1x8x24xbf16>
    %73 = vector.shape_cast %72 : vector<1x8x24xbf16> to vector<8x24xbf16>
    %cst_37 = arith.constant dense<0.000000e+00> : vector<8x256xf32>
    %74 = tpu.matmul %73, %68, %cst_37 {dimension_numbers = #tpu.dot_dimension_numbers<[1], [0], [0], [1], [0, 0, 1, 1], [], []>} : vector<8x24xbf16>, vector<24x256xbf16>, vector<8x256xf32> -> vector<8x256xf32>
    %c2_38 = arith.constant 2 : index
    %c0_39 = arith.constant 0 : index
    %c0_40 = arith.constant 0 : index
    %75 = vector.load %arg4[%c2_38, %c0_39, %c0_40] : memref<3x8x24xbf16, #tpu.memory_space<vmem>>, vector<1x8x24xbf16>
    %76 = vector.shape_cast %75 : vector<1x8x24xbf16> to vector<8x24xbf16>
    %cst_41 = arith.constant dense<0.000000e+00> : vector<8x256xf32>
    %77 = tpu.matmul %76, %68, %cst_41 {dimension_numbers = #tpu.dot_dimension_numbers<[1], [0], [0], [1], [0, 0, 1, 1], [], []>} : vector<8x24xbf16>, vector<24x256xbf16>, vector<8x256xf32> -> vector<8x256xf32>
    %c1_i32_42 = arith.constant 1 : i32
    %78 = tpu.dynamic_rotate %71 by %c1_i32_42 dim 1 : vector<8x256xf32>, i32 -> vector<8x256xf32>
    %cst_43 = arith.constant 0.000000e+00 : f32
    %79 = vector.broadcast %cst_43 : f32 to vector<8x256xf32>
    %80 = arith.select %24, %79, %78 : vector<8x256xi1>, vector<8x256xf32>
    %81 = arith.addf %74, %80 : vector<8x256xf32>
    %c255_i32_44 = arith.constant 255 : i32
    %82 = tpu.dynamic_rotate %77 by %c255_i32_44 dim 1 : vector<8x256xf32>, i32 -> vector<8x256xf32>
    %cst_45 = arith.constant 0.000000e+00 : f32
    %83 = vector.broadcast %cst_45 : f32 to vector<8x256xf32>
    %84 = arith.select %26, %83, %82 : vector<8x256xi1>, vector<8x256xf32>
    %85 = arith.addf %81, %84 : vector<8x256xf32>
    %c0_46 = arith.constant 0 : index
    %c0_47 = arith.constant 0 : index
    %86 = vector.load %arg5[%c0_46, %c0_47] : memref<8x1xf32, #tpu.memory_space<vmem>>, vector<8x1xf32>
    %87 = vector.broadcast %86 : vector<8x1xf32> to vector<8x256xf32>
    %88 = arith.addf %85, %87 : vector<8x256xf32>
    %89 = arith.addf %88, %1 : vector<8x256xf32>
    %cst_48 = arith.constant 0.000000e+00 : f32
    %90 = vector.broadcast %cst_48 : f32 to vector<8x256xf32>
    %91 = arith.maximumf %89, %90 : vector<8x256xf32>
    %c0_49 = arith.constant 0 : index
    %c0_50 = arith.constant 0 : index
    %c0_51 = arith.constant 0 : index
    %92 = vector.load %arg6[%c0_49, %c0_50, %c0_51] : memref<1x8x256xf32, #tpu.memory_space<vmem>>, vector<1x8x256xf32>
    %93 = vector.shape_cast %92 : vector<1x8x256xf32> to vector<8x256xf32>
    %94 = vector.shape_cast %91 : vector<8x256xf32> to vector<1x8x256xf32>
    tpu.vector_store %arg6[%c0_49, %c0_50, %c0_51], %94 {strides = array<i32>} : memref<1x8x256xf32, #tpu.memory_space<vmem>>, vector<1x8x256xf32>,
    return
  }
  func.func @transform_0(%arg0: i32) -> (i32, i32, i32) {
    %c0_i32 = arith.constant 0 : i32
    %c0_i32_0 = arith.constant 0 : i32
    %c0_i32_1 = arith.constant 0 : i32
    return %arg0, %c0_i32, %c0_i32_0 : i32, i32, i32
  }
  func.func @transform_1(%arg0: i32) -> (i32, i32, i32) {
    %c0_i32 = arith.constant 0 : i32
    %c0_i32_0 = arith.constant 0 : i32
    %c0_i32_1 = arith.constant 0 : i32
    %c0_i32_2 = arith.constant 0 : i32
    return %c0_i32, %c0_i32_0, %c0_i32_1 : i32, i32, i32
  }
  func.func @transform_2(%arg0: i32) -> (i32, i32) {
    %c0_i32 = arith.constant 0 : i32
    %c0_i32_0 = arith.constant 0 : i32
    %c0_i32_1 = arith.constant 0 : i32
    return %c0_i32, %c0_i32_0 : i32, i32
  }
  func.func @transform_3(%arg0: i32) -> (i32, i32, i32) {
    %c0_i32 = arith.constant 0 : i32
    %c0_i32_0 = arith.constant 0 : i32
    %c0_i32_1 = arith.constant 0 : i32
    %c0_i32_2 = arith.constant 0 : i32
    return %c0_i32, %c0_i32_0, %c0_i32_1 : i32, i32, i32
  }
  func.func @transform_4(%arg0: i32) -> (i32, i32) {
    %c0_i32 = arith.constant 0 : i32
    %c0_i32_0 = arith.constant 0 : i32
    %c0_i32_1 = arith.constant 0 : i32
    return %c0_i32, %c0_i32_0 : i32, i32
  }
  func.func @transform_5(%arg0: i32) -> (i32, i32, i32) {
    %c0_i32 = arith.constant 0 : i32
    %c0_i32_0 = arith.constant 0 : i32
    %c0_i32_1 = arith.constant 0 : i32
    return %arg0, %c0_i32, %c0_i32_0 : i32, i32, i32
  }
}

</mosaic_0001>

<bundles_post_ra>
// kernel: tpu_custom_call.1
= control target key start
LH: loop header
LB: loop body
LE: loop exit
PB: predicated region body
PF: predicated region fallthrough
CT: control target
= control target key end

     0   :  { %10 = vsyncpa [#allocation3], 0  ;;  %s1309_s0 = inlined_call_operand.hbm [shape: f32[2,8,256], index: 0, kind: input, shape index: {}]   ;;  %s1310_s1 = inlined_call_operand.vmem [shape: bf16[3,8,24], index: 1, kind: input, shape index: {}]   ;;  %s1311_s2 = inlined_call_operand.vmem [shape: f32[8,1], index: 2, kind: input, shape index: {}]   ;;  %s1312_s3 = inlined_call_operand.hbm [shape: bf16[3,8,24], index: 3, kind: input, shape index: {}]   ;;  %s1313_s4 = inlined_call_operand.vmem [shape: f32[8,1], index: 4, kind: input, shape index: {}]   ;;  %s1314_s5 = inlined_call_operand.hbm [shape: f32[2,8,256], index: 5, kind: output, shape index: {}]  }
   0x1   :  { %12 = vsyncpa [#allocation3 + $0x1], 0 }
   0x2   :  { %13 = vsyncpa [#allocation6], 0 }
   0x3   :  { %14 = vsyncpa [#allocation4], 0 }
   0x4   :  { %16 = vsyncpa [#allocation4 + $0x1], 0  ;;  %s1028_s18 = smov 0   ;;  %s1030_s19 = smov 0  }
   0x5   :  { %s1032_s20 = smov 0   ;;  %s1034_s21 = smov 0  }
   0x6 LB: > { %s180_s24 = sshll.u32 %s1312_s3, 4  ;;  %s1052_s25 = sadd.s32 4294967295, %s988_s21   ;;  %s988_s21 = sphi %s1034_s21, %s1332_s21   ;;  %s984_s20 = sphi %s1032_s20, %s1331_s20   ;;  %s980_s19 = sphi %s1030_s19, %s1330_s19   ;;  %s976_s18 = sphi %s1028_s18, %s1329_s18   ;;  %s181_s24 = int_to_ptr.hbm [resolvable:$true] %s180_s24 }
   0x7   : > { %p741_p0 = scmp.ge.s32.totalorder %s988_s21, 1  ;;  %p43_p1 = scmp.eq.s32.totalorder %s1052_s25, 0 }
   0x8   : > { %p163_p2 = scmp.lt.s32.totalorder %s988_s21, 3  ;;  %s990_s27 = smov [#allocation5]  }
   0x9   : > { %s182_s28 = sshll.u32 %s990_s27, 4  ;;  %s991_s29 = smov 64   ;;  %s183_s28 = int_to_ptr.vmem [resolvable:$true] %s182_s28 }
   0xa   : > { %p1057_p3 = pnand %p741_p0, %p163_p2  ;;  %s992_s30 = smov 4  }
   0xb   : > { %s740_s6 = sadd.s32 4294967294, %s988_s21   ;;  %s1068_s7 = sadd.s32 1, %s988_s21  }
   0xc   : > { %p780_p4 = pneg %p1057_p3  ;;  %s29_s8 = sadd.s32 1, %s984_s20 }
   0xd   : > { %s26_s9 = ssub.s32 %s988_s21, %s1068_s7  ;;  %p36_p7 = scmp.ne.s32.totalorder %s984_s20, %s980_s19 }
   0xe   : > { %p781_p6 = pnand %p780_p4, %p43_p1  ;;  %p27_p8 = scmp.eq.s32.totalorder %s26_s9, 0 }
   0xf   : > { %p37_p9 = scmp.eq.s32.totalorder %s988_s21, 0  ;;  %p42_p10 = scmp.ne.s32.totalorder %s980_s19, %s976_s18 }
  0x10   : > { %783 = dma.hbm_to_vmem [thread:$0]  (!%p781_p6), %s181_s24, 192, %s183_s28, [#allocation6], %s991_s29, %s991_s29, %s992_s30  }
  0x11   : > { %p150_p11 = scmp.eq.s32.totalorder %s1052_s25, 1  ;;  %p1084_p12 = por %p43_p1, %p42_p10 }
  0x12   : > { %s1080_s10 = scalar_select %p27_p8, %s984_s20, %s29_s8  }
  0x13   : > { %p1088_p13 = por %p150_p11, %p36_p7  ;;  %p156_p0 = scmp.eq.s32.totalorder %s740_s6, 1 }
  0x14   : > { %p38_p2 = por %p37_p9, %p36_p7  ;;  %s199_s13 = sand.u32 1, %s984_s20  }
  0x15   : > { %p1093_p4 = por %p156_p0, %p42_p10  ;;  %p793_p6 = scmp.lt.s32.totalorder %s988_s21, 2 }
  0x16   : > { %s744_s15 = sshll.u32 %s199_s13, 4  ;;  %s770_s16 = sshll.u32 %s988_s21, 4 }
  0x17   : > { %s208_s23 = scalar_lea.hbm %s1309_s0, %s770_s16  ;;  %s203_s27 = scalar_lea.vmem [#allocation2], %s744_s15 }
  0x18   : > { %s210_s24 = sshll.u32 %s208_s23, 4  ;;  %s212_s28 = sshll.u32 %s203_s27, 4  ;;  %s211_s24 = int_to_ptr.hbm [resolvable:$true] %s210_s24  ;;  %s213_s28 = int_to_ptr.vmem [resolvable:$true] %s212_s28 }
  0x19   : > { %p1102_p8 = pnand %p793_p6, %p38_p2  ;;  %s200_s30 = scalar_lea.sflag [#allocation3], %s199_s13 }
  0x1a   : > { %s888_s6 = sshra.s32 %s211_s24, 4  ;;  %s895_s15 = scalar_lea.hbm %s1309_s0, 32  ;;  %s889_s6 = int_to_ptr.hbm [resolvable:$true] %s888_s6 }
  0x1b   : > { %s890_s8 = scalar_lea.hbm %s889_s6, 16  ;;  %p892_p9 = pneg %p1102_p8 }
  0x1c   : > { %p891_p7 = scmp.ne.s32.totalorder %s889_s6, %s890_s8  ;;  %p896_p0 = scmp.lt.s32.totalorder %s889_s6, %s1309_s0 }
  0x1d   : > { %p897_p2 = scmp.lt.s32.totalorder %s895_s15, %s890_s8 }
  0x1e   : > { %p893_p10 = pnand %p892_p9, %p891_p7 }
  0x1f   : > { %p898_p6 = por %p897_p2, %p896_p0 }
  0x20   : > { %p894_p11 = pneg %p893_p10 }
  0x22   : > { %p899_p5 = pnand %p898_p6, %p894_p11 }
  0x24   : > { %902 = shalt.err (!%p899_p5)
}
  0x25   : > { %787 = dma.hbm_to_vmem [thread:$0]  (!%p1102_p8), %s211_s24, 256, %s213_s28, %s200_s30  }
  0x26   : > { %221 = sbr.rel (%p1057_p3) target bundleno = 849 (0x351), region = 40  ;;  %s1119_s13 = sand.u32 (!%p1057_p3), 1, %s980_s19  }
  0x27   : > { %s748_s23 = sshll.u32 (!%p1057_p3), %s1119_s13, 4  ;;  %s224_s27 = scalar_lea.sflag (!%p1057_p3), [#allocation3], %s1119_s13 }
  0x28   : > { %s227_s6 = scalar_lea.vmem (!%p1057_p3), [#allocation2], %s748_s23 }
  0x2b   : > { %963 = dma.done.wait (%p1084_p12), %s224_s27, 256  }
  0x2c   : > { %965 = vsyncadd (%p1084_p12), %s224_s27, 4294967040 }
  0x2d   : > { %967 = dma.done.wait (%p43_p1), [#allocation6], 192  }
  0x2e   : > { %969 = vsyncadd (%p43_p1), [#allocation6], 4294967104  ;;  %v1133_v0 = vld [vmem:[%s227_s6] sm:$0xff]  ;;  %v1135_v1 = vld [vmem:[%s227_s6 + $0x8] sm:$0xff]  ;;  %s993_s26 = smov 112   ;;  %s994_s24 = smov 16   ;;  %v263_v3 = vlaneseq }
  0x2f   : > { %v836_v2 = vpack.i.bf16 %v1135_v1, %v1133_v0  ;;  %v316_v13 = vpack.c.bf16 %v1135_v1, %v1133_v0  ;;  %vm333_vm3 = vcmask 1043456   ;;  %v342_v37 = vld [vmem:[%s1310_s1] sm:$0xf]  ;;  %vm343_vm4 = vcmask 195584   ;;  %v754_v38 = vld [vmem:[%s1310_s1 + $0x8] sm:$0xf] }
  0x30   : > { %v1141_v4 = vand.u32 127, %v263_v3  ;;  %v753_v39 = vld [vmem:[%s1310_s1 + $0x4] sm:$0xf]  ;;  %v995_v41 = vmov 0   ;;  %s996_s17 = smov 1   ;;  %s997_s22 = smov 127  }
  0x31   : > { %837 = vrot.lane.b32.xlu0 %v836_v2, %s993_s26  ;;  %v324_v21 = vunpack.c.l.b16 %v316_v13  ;;  %v325_v22 = vunpack.c.h.b16 %v316_v13  ;;  %v461_v40 = vld [vmem:[%s1311_s2] sm:$0xff]  ;;  %857 = vset.pattern.permute.xlu2 %v995_v41  ;;  %s644_s8 = scalar_lea.sflag [#allocation4], %s1119_s13 }
  0x32   : > { %v1144_v5 = vadd.s32 128, %v1141_v4  ;;  %vm310_vm0 = vcmp.lt.s32.totalorder %v1141_v4, 112  ;;  %vm290_vm2 = vcmp.lt.s32.totalorder %v1141_v4, 16  ;;  %846 = vset.pattern.permute.xlu0 %v995_v41  ;;  %v270_v56 = vand.u32 15, %v1141_v4 }
  0x33   : > { %v326_v30 = vpack.c.b16 %v324_v21, %v324_v21  ;;  %v327_v32 = vpack.c.b16 %v325_v22, %v325_v22  ;;  %vm454_vm5 = vcmp.lt.s32.totalorder %v1141_v4, 127  ;;  %vm416_vm6 = vcmp.lt.s32.totalorder %v1141_v4, 1 }
  0x34   : > { %vm293_vm1 = vcmp.ge.s32.totalorder %v1144_v5, 240  ;;  %v277_v57 = vand.u32 15, %v1144_v5  ;;  %vm1193_vm7 = vcmp.eq.s32.totalorder %v270_v56, 0  ;;  %vm1201_vm9 = vcmp.eq.s32.totalorder %v270_v56, 15 }
  0x36   : > { %vm1197_vm8 = vcmp.eq.s32.totalorder %v277_v57, 0  ;;  %vm1205_vm10 = vcmp.eq.s32.totalorder %v277_v57, 15 }
  0x39   : > { %842 = vrot.lane.b32.xlu0 %v836_v2, %s994_s24 }
  0x41   : > { %464 = vperm.xlu0 %846, %v461_v40  }
  0xa3   : > { %v838_v6 = vpop.permute.xlu0 %837 }
  0xa4   : > { %v840_v7 = vunpack.i.h.bf16 %v838_v6  ;;  %v839_v8 = vunpack.i.l.bf16 %v838_v6 }
  0xa6   : > { %v311_v9 = vsel %vm310_vm0, %v839_v8, %v840_v7  ;;  %v312_v10 = vsel %vm310_vm0, %v840_v7, %v839_v8 }
  0xa7   : > { %v314_v11 = vsel %vm293_vm1, 0.0, %v312_v10 }
  0xa8   : > { %v317_v12 = vpack.c.bf16 %v314_v11, %v311_v9 }
  0xaa   : > { %v329_v14 = vunpack.c.l.b16 %v317_v12  ;;  %v330_v15 = vunpack.c.h.b16 %v317_v12 }
  0xab   : > { %v843_v16 = vpop.permute.xlu0 %842 }
  0xac   : > { %v845_v17 = vunpack.i.h.bf16 %v843_v16  ;;  %v844_v18 = vunpack.i.l.bf16 %v843_v16  ;;  %v331_v19 = vpack.c.b16 %v329_v14, %v329_v14  ;;  %v332_v20 = vpack.c.b16 %v330_v15, %v330_v15 }
  0xae   : > { %v302_v23 = vsel %vm290_vm2, %v844_v18, %v845_v17  ;;  %v303_v24 = vsel %vm290_vm2, %v845_v17, %v844_v18  ;;  %v348_v25 = vsel %vm333_vm3, %v331_v19, 0  ;;  %v351_v26 = vsel %vm333_vm3, %v332_v20, 0 }
  0xaf   : > { %v304_v27 = vsel %vm290_vm2, 0.0, %v303_v24  ;;  %359 = vmatpush.bf16.msra.mxu0 %v348_v25  ;;  %372 = vmatpush.bf16.msra.mxu1 %v351_v26 }
  0xb0   : > { %v315_v28 = vpack.c.bf16 %v302_v23, %v304_v27  ;;  %392 = vmatpush.bf16.msra.mxu2 %v348_v25  ;;  %405 = vmatpush.bf16.msra.mxu3 %v351_v26 }
  0xb2   : > { %v319_v29 = vunpack.c.l.b16 %v315_v28  ;;  %v320_v31 = vunpack.c.h.b16 %v315_v28 }
  0xb3   : > { %v465_v14 = vpop.permute.xlu0 %464 }
  0xb4   : > { %v321_v33 = vpack.c.b16 %v319_v29, %v319_v29  ;;  %v322_v34 = vpack.c.b16 %v320_v31, %v320_v31 }
  0xb6   : > { %v336_v35 = vsel %vm333_vm3, %v321_v33, %v326_v30  ;;  %v340_v36 = vsel %vm333_vm3, %v322_v34, %v327_v32 }
  0xb7   : > { %360 = vmatpush.bf16.msra.mxu0 %v336_v35  ;;  %373 = vmatpush.bf16.msra.mxu1 %v340_v36 }
  0xb8   : > { %393 = vmatpush.bf16.msra.mxu2 %v336_v35  ;;  %406 = vmatpush.bf16.msra.mxu3 %v340_v36 }
  0xba   : > { %751 = vmatmul.msk.bf16.vlgmr.msra.gmra.mxu0 %vm343_vm4, %v342_v37  ;;  %752 = vmatmul.msk.bf16.vlgmr.msra.gmra.mxu1 %vm343_vm4, %v342_v37 }
  0xbb   : > { %430 = vmatpush.bf16.msrb.mxu0 %v348_v25  ;;  %443 = vmatpush.bf16.msrb.mxu1 %v351_v26 }
  0xbc   : > { %755 = vmatmul.msk.bf16.vlgmr.msra.gmra.mxu2 %vm343_vm4, %v754_v38  ;;  %756 = vmatmul.msk.bf16.vlgmr.msra.gmra.mxu3 %vm343_vm4, %v754_v38 }
  0xbf   : > { %431 = vmatpush.bf16.msrb.mxu0 %v336_v35  ;;  %444 = vmatpush.bf16.msrb.mxu1 %v340_v36 }
  0xca   : > { %757 = vmatmul.msk.bf16.vlgmr.msrb.gmra.mxu0 %vm343_vm4, %v753_v39  ;;  %758 = vmatmul.msk.bf16.vlgmr.msrb.gmra.mxu1 %vm343_vm4, %v753_v39 }
 0x137   : > { %v362_v42 = vpop.f32.mrf.mxu0  ;;  %v375_v43 = vpop.f32.mrf.mxu1 }
 0x138   : > { %412 = vrot.lane.b32.xlu1 %v362_v42, %s996_s17 }
 0x13f   : > { %v395_v44 = vpop.f32.mrf.mxu2  ;;  %v408_v45 = vpop.f32.mrf.mxu3 }
 0x140   : > { %v364_v46 = vpop.f32.mrf.mxu0  ;;  %v377_v47 = vpop.f32.mrf.mxu1  ;;  %450 = vrot.lane.b32.xlu2 %v395_v44, %s997_s22  ;;  %414 = vrot.lane.b32.xlu1 %v375_v43, %s996_s17 }
 0x147   : > { %v397_v48 = vpop.f32.mrf.mxu2  ;;  %v410_v49 = vpop.f32.mrf.mxu3 }
 0x148   : > { %452 = vrot.lane.b32.xlu2 %v408_v45, %s997_s22  ;;  %v446_v50 = vpop.f32.mrf.mxu1  ;;  %v433_v51 = vpop.f32.mrf.mxu0 }
 0x150   : > { %v435_v52 = vpop.f32.mrf.mxu0  ;;  %v448_v53 = vpop.f32.mrf.mxu1 }
 0x151   : > { %v513_v52 = vld [vmem:[#allocation5] sm:$0xf]  ;;  %v552_v53 = vld [vmem:[#allocation5 + $0x8] sm:$0xf] }
 0x19a   : > { %v451_v54 = vpop.permute.xlu2 %450 }
 0x1a2   : > { %v453_v58 = vpop.permute.xlu2 %452 }
 0x1a3   : > { %v455_v2 = vsel %vm454_vm5, %v451_v54, %v453_v58  ;;  %v456_v3 = vsel %vm454_vm5, %v453_v58, %v451_v54  ;;  %v550_v54 = vld [vmem:[#allocation5 + $0x4] sm:$0xf] }
 0x1a4   : > { %v457_v12 = vsel %vm1201_vm9, 0.0, %v455_v2  ;;  %v458_v13 = vsel %vm1205_vm10, 0.0, %v456_v3  ;;  %v629_v3 = vld [vmem:[%s1313_s4] sm:$0xff] }
 0x1aa   : > { %v413_v55 = vpop.permute.xlu1 %412 }
 0x1b2   : > { %v415_v63 = vpop.permute.xlu1 %414 }
 0x1b3   : > { %v417_v6 = vsel %vm416_vm6, %v413_v55, %v415_v63  ;;  %v418_v7 = vsel %vm416_vm6, %v415_v63, %v413_v55 }
 0x1b4   : > { %v419_v8 = vsel %vm1193_vm7, 0.0, %v418_v7  ;;  %v420_v9 = vsel %vm1197_vm8, 0.0, %v417_v6 }
 0x1b5   : > { %v434_v10 = vadd.f32 %v433_v51, %v419_v8  ;;  %v447_v11 = vadd.f32 %v446_v50, %v420_v9 }
 0x1b7   : > { %v459_v15 = vadd.f32 %v457_v12, %v434_v10  ;;  %v460_v16 = vadd.f32 %v458_v13, %v447_v11 }
 0x1b9   : > { %v467_v17 = vadd.f32 %v465_v14, %v459_v15  ;;  %v468_v18 = vadd.f32 %v465_v14, %v460_v16 }
 0x1bb   : > { %v469_v19 = vmax.f32 %v467_v17, 0.0  ;;  %v470_v20 = vmax.f32 %v468_v18, 0.0 }
 0x1bd   : > { %v488_v21 = vpack.c.bf16 %v470_v20, %v469_v19  ;;  %v852_v22 = vpack.i.bf16 %v470_v20, %v469_v19 }
 0x1bf   : > { %853 = vrot.lane.b32.xlu2 %v852_v22, %s994_s24  ;;  %848 = vrot.lane.b32.xlu1 %v852_v22, %s993_s26  ;;  %v496_v43 = vunpack.c.l.b16 %v488_v21  ;;  %v497_v44 = vunpack.c.h.b16 %v488_v21  ;;  %s771_s26 = sshll.u32 %s1052_s25, 4  ;;  %s259_s25 = scalar_lea.vmem [#allocation7], %s748_s23 }
 0x1c0   : > { %s655_s28 = scalar_lea.hbm %s1314_s5, %s771_s26  ;;  %s657_s29 = sshll.u32 %s259_s25, 4  ;;  %s658_s29 = int_to_ptr.vmem [resolvable:$true] %s657_s29 }
 0x1c1   : > { %v498_v5 = vpack.c.b16 %v496_v43, %v496_v43  ;;  %v499_v49 = vpack.c.b16 %v497_v44, %v497_v44  ;;  %s659_s30 = sshll.u32 %s655_s28, 4  ;;  %s938_s23 = scalar_lea.hbm %s1314_s5, 32  ;;  %s660_s30 = int_to_ptr.hbm [resolvable:$true] %s659_s30 }
 0x1c2   : > { %s932_s9 = sshra.s32 %s660_s30, 4  ;;  %s933_s9 = int_to_ptr.hbm [resolvable:$true] %s932_s9 }
 0x1c3   : > { %s934_s16 = scalar_lea.hbm %s933_s9, 16  ;;  %p939_p12 = scmp.lt.s32.totalorder %s933_s9, %s1314_s5 }
 0x1c4   : > { %p935_p1 = scmp.ne.s32.totalorder %s933_s9, %s934_s16  ;;  %p940_p8 = scmp.lt.s32.totalorder %s938_s23, %s934_s16 }
 0x1c6   : > { %p936_p3 = pnand %p935_p1, %p1088_p13  ;;  %p941_p7 = por %p940_p8, %p939_p12 }
 0x1c8   : > { %p937_p5 = pneg %p936_p3 }
 0x1ca   : > { %p942_p9 = pnand %p941_p7, %p937_p5 }
 0x219   : > { %v854_v23 = vpop.permute.xlu2 %853 }
 0x21a   : > { %v856_v24 = vunpack.i.h.bf16 %v854_v23  ;;  %v855_v25 = vunpack.i.l.bf16 %v854_v23 }
 0x21c   : > { %v476_v26 = vsel %vm290_vm2, %v856_v24, %v855_v25  ;;  %v475_v27 = vsel %vm290_vm2, %v855_v25, %v856_v24 }
 0x21d   : > { %v477_v28 = vsel %vm290_vm2, 0.0, %v476_v26 }
 0x21e   : > { %v487_v32 = vpack.c.bf16 %v475_v27, %v477_v28 }
 0x220   : > { %v491_v39 = vunpack.c.l.b16 %v487_v32  ;;  %v492_v40 = vunpack.c.h.b16 %v487_v32 }
 0x222   : > { %v493_v47 = vpack.c.b16 %v491_v39, %v491_v39  ;;  %v494_v48 = vpack.c.b16 %v492_v40, %v492_v40 }
 0x224   : > { %v507_v50 = vsel %vm333_vm3, %v493_v47, %v498_v5  ;;  %v511_v51 = vsel %vm333_vm3, %v494_v48, %v499_v49 }
 0x231   : > { %v849_v29 = vpop.permute.xlu1 %848 }
 0x232   : > { %v851_v30 = vunpack.i.h.bf16 %v849_v29  ;;  %v850_v31 = vunpack.i.l.bf16 %v849_v29 }
 0x234   : > { %v483_v33 = vsel %vm310_vm0, %v850_v31, %v851_v30  ;;  %v484_v34 = vsel %vm310_vm0, %v851_v30, %v850_v31 }
 0x235   : > { %v486_v35 = vsel %vm293_vm1, 0.0, %v484_v34 }
 0x236   : > { %v489_v36 = vpack.c.bf16 %v486_v35, %v483_v33 }
 0x238   : > { %v501_v37 = vunpack.c.l.b16 %v489_v36  ;;  %v502_v38 = vunpack.c.h.b16 %v489_v36 }
 0x23a   : > { %v503_v41 = vpack.c.b16 %v501_v37, %v501_v37  ;;  %v504_v42 = vpack.c.b16 %v502_v38, %v502_v38 }
 0x23c   : > { %v518_v45 = vsel %vm333_vm3, %v503_v41, 0  ;;  %v521_v46 = vsel %vm333_vm3, %v504_v42, 0 }
 0x23d   : > { %529 = vmatpush.bf16.msrb.mxu2 %v518_v45  ;;  %542 = vmatpush.bf16.msrb.mxu3 %v521_v46 }
 0x23e   : > { %562 = vmatpush.bf16.msra.mxu0 %v518_v45  ;;  %575 = vmatpush.bf16.msra.mxu1 %v521_v46 }
 0x241   : > { %530 = vmatpush.bf16.msrb.mxu2 %v507_v50  ;;  %543 = vmatpush.bf16.msrb.mxu3 %v511_v51 }
 0x242   : > { %563 = vmatpush.bf16.msra.mxu0 %v507_v50  ;;  %576 = vmatpush.bf16.msra.mxu1 %v511_v51 }
 0x244   : > { %759 = vmatmul.msk.bf16.vlgmr.msrb.gmra.mxu2 %vm343_vm4, %v513_v52  ;;  %760 = vmatmul.msk.bf16.vlgmr.msrb.gmra.mxu3 %vm343_vm4, %v513_v52 }
 0x245   : > { %599 = vmatpush.bf16.msra.mxu2 %v518_v45  ;;  %612 = vmatpush.bf16.msra.mxu3 %v521_v46 }
 0x246   : > { %761 = vmatmul.msk.bf16.vlgmr.msra.gmra.mxu0 %vm343_vm4, %v552_v53  ;;  %762 = vmatmul.msk.bf16.vlgmr.msra.gmra.mxu1 %vm343_vm4, %v552_v53 }
 0x249   : > { %600 = vmatpush.bf16.msra.mxu2 %v507_v50  ;;  %613 = vmatpush.bf16.msra.mxu3 %v511_v51 }
 0x254   : > { %763 = vmatmul.msk.bf16.vlgmr.msra.gmra.mxu2 %vm343_vm4, %v550_v54  ;;  %764 = vmatmul.msk.bf16.vlgmr.msra.gmra.mxu3 %vm343_vm4, %v550_v54 }
 0x2c3   : > { %v565_v55 = vpop.f32.mrf.mxu0  ;;  %v578_v56 = vpop.f32.mrf.mxu1 }
 0x2c4   : > { %619 = vrot.lane.b32.xlu0 %v565_v55, %s997_s22 }
 0x2c7   : > { %v532_v57 = vpop.f32.mrf.mxu2  ;;  %v545_v58 = vpop.f32.mrf.mxu3 }
 0x2c8   : > { %582 = vrot.lane.b32.xlu1 %v532_v57, %s996_s17  ;;  %584 = vrot.lane.b32.xlu2 %v545_v58, %s996_s17 }
 0x2cb   : > { %v567_v63 = vpop.f32.mrf.mxu0  ;;  %v580_v2 = vpop.f32.mrf.mxu1 }
 0x2cf   : > { %v534_v6 = vpop.f32.mrf.mxu2  ;;  %v547_v7 = vpop.f32.mrf.mxu3 }
 0x2d0   : > { %621 = vrot.lane.b32.xlu1 %v578_v56, %s997_s22  ;;  %632 = vperm.xlu2 %857, %v629_v3  }
 0x2d7   : > { %v602_v8 = vpop.f32.mrf.mxu2  ;;  %v615_v9 = vpop.f32.mrf.mxu3 }
 0x2df   : > { %v604_v10 = vpop.f32.mrf.mxu2  ;;  %v617_v11 = vpop.f32.mrf.mxu3 }
 0x322   : > { %v585_v13 = vpop.permute.xlu2 %584 }
 0x32a   : > { %v633_v60 = vpop.permute.xlu2 %632 }
 0x336   : > { %v620_v18 = vpop.permute.xlu0 %619 }
 0x33a   : > { %v583_v12 = vpop.permute.xlu1 %582 }
 0x33b   : > { %v586_v14 = vsel %vm416_vm6, %v583_v12, %v585_v13  ;;  %v587_v15 = vsel %vm416_vm6, %v585_v13, %v583_v12 }
 0x33c   : > { %v588_v16 = vsel %vm1193_vm7, 0.0, %v587_v15  ;;  %v589_v17 = vsel %vm1197_vm8, 0.0, %v586_v14 }
 0x33d   : > { %v603_v20 = vadd.f32 %v602_v8, %v588_v16  ;;  %v616_v21 = vadd.f32 %v615_v9, %v589_v17 }
 0x342   : > { %v622_v19 = vpop.permute.xlu1 %621 }
 0x343   : > { %v623_v22 = vsel %vm454_vm5, %v620_v18, %v622_v19  ;;  %v624_v23 = vsel %vm454_vm5, %v622_v19, %v620_v18 }
 0x344   : > { %v625_v24 = vsel %vm1201_vm9, 0.0, %v623_v22  ;;  %v626_v59 = vsel %vm1205_vm10, 0.0, %v624_v23 }
 0x345   : > { %v627_v25 = vadd.f32 %v625_v24, %v603_v20  ;;  %v628_v26 = vadd.f32 %v626_v59, %v616_v21 }
 0x347   : > { %v635_v27 = vadd.f32 %v633_v60, %v627_v25  ;;  %v636_v28 = vadd.f32 %v633_v60, %v628_v26 }
 0x349   : > { %v637_v4 = vadd.f32 %v635_v27, %v1133_v0  ;;  %v638_v29 = vadd.f32 %v636_v28, %v1135_v1 }
 0x34b   : > { %v639_v61 = vmax.f32 %v637_v4, 0.0  ;;  %v640_v62 = vmax.f32 %v638_v29, 0.0 }
 0x34d   : > { %641 = vst [vmem:[%s259_s25] sm:$0xff] %v639_v61 }
 0x34e   : > { %642 = vst [vmem:[%s259_s25 + $0x8] sm:$0xff] %v640_v62 }
 0x34f   : > { %945 = shalt.err (!%p942_p9)
}
 0x350   : > { %778 = dma.vmem_to_hbm [thread:$0]  (%p1088_p13), %s658_s29, 256, %s660_s30, %s644_s8  }
 0x351 PF: > { %s671_s13 = sand.u32 1, %s976_s18   ;;  %p1328_p10 = scmp.ge.s32.totalorder %s988_s21, 2 }
 0x352   : > { %s672_s6 = scalar_lea.sflag [#allocation4], %s671_s13 }
 0x353   : > { %p789_p11 = pnand %p1328_p10, %p1093_p4 }
 0x355   : > { %p790_p0 = pneg %p789_p11 }
 0x357   : > { %971 = dma.done.wait (%p790_p0), %s672_s6, 256  }
 0x358   : > { %973 = vsyncadd (%p790_p0), %s672_s6, 4294967040  ;;  %p19_p2 = scmp.ge.s32.totalorder %s1068_s7, 4   ;;  %s1329_s18 = smov %s980_s19 }
 0x359   : > { %s1330_s19 = smov %s984_s20  ;;  %s1331_s20 = smov %s1080_s10 }
 0x35a   : > { %s1332_s21 = smov %s1068_s7  ;;  %21 = sbr.rel (!%p19_p2) target bundleno = 6 (0x6), region = 93 }
 0x35f   :  { %678 = vsyncpa [#allocation3], 1 }
 0x360   :  { %680 = vsyncpa [#allocation3 + $0x1], 1 }
 0x361   :  { %681 = vsyncpa [#allocation6], 1 }
 0x362   :  { %682 = vsyncpa [#allocation4], 1 }
 0x363   :  { %684 = vsyncpa [#allocation4 + $0x1], 1 }

</bundles_post_ra>
